<compile_context>
chip_gen: v7x
topology: tpu7x:2x2x1
jax: 0.10.0
libtpu: 0.0.40
codegen_flags: <defaults>
</compile_context>

<pallas_src>
import functools

import jax
import jax.numpy as jnp
from jax import lax
from jax.experimental import pallas as pl
from jax.experimental.pallas import tpu as pltpu

IN_FEAT = 28 * 28
H1 = 256
H2 = 128
OUT = 10
OUT_PAD = 128          # lane-dense output block (sliced back to 10 in the wrapper)
BN_EPS = 1e-5
TB_MAX = 1024          # max batch tile (x tile: 2 x 3.1 MiB f32, well in VMEM)


def _round_up(n, m):
    return ((n + m - 1) // m) * m


def _pick_tile(B):
    """Choose (batch_tile, num_grid_steps) minimizing padding; >=2 steps when
    the batch is large enough so v7x megacore sharding has work on both cores."""
    if B <= 32:
        tb = _round_up(max(B, 16), 16)      # 16-sublane multiple (bf16 packing)
        return tb, 1
    n = max(2, pl.cdiv(B, TB_MAX))          # at least 2 grid steps
    tb = _round_up(pl.cdiv(B, n), 16)
    n = pl.cdiv(B, tb)
    return tb, n


def mlp_kernel(x_ref, w1_ref, b1_ref, w2_ref, b2_ref, w3_ref, o_ref):
    # x arrives f32; cast to bf16 in-kernel (rides free in VPU slack).
    x = x_ref[...].astype(jnp.bfloat16)
    # fc1 + relu (bf16 MXU, f32 accumulate, f32 elementwise)
    h1 = jnp.dot(x, w1_ref[...], preferred_element_type=jnp.float32)
    h1 = jnp.maximum(h1 + b1_ref[...], 0.0)
    # fc2 + relu
    h2 = jnp.dot(h1.astype(jnp.bfloat16), w2_ref[...],
                 preferred_element_type=jnp.float32)
    h2 = jnp.maximum(h2 + b2_ref[...], 0.0)
    # fc3 (bias dropped: it cancels under BatchNorm's per-feature mean subtraction)
    z = jnp.dot(h2.astype(jnp.bfloat16), w3_ref[...],
                preferred_element_type=jnp.float32)
    o_ref[...] = z.astype(o_ref.dtype)      # bf16, 128-lane-dense store


def prepare_params(params):
    """One-time (outside the per-call jit) weight prep: bf16 cast + w3 lane pad."""
    w1, b1, w2, b2, w3, b3, gamma, beta = params
    del b3  # exactly cancelled by BatchNorm's per-feature batch-mean subtraction
    w1_bf = w1.astype(jnp.bfloat16)
    w2_bf = w2.astype(jnp.bfloat16)
    w3_bf = jnp.pad(w3, ((0, 0), (0, OUT_PAD - OUT))).astype(jnp.bfloat16)
    return (w1_bf, b1, w2_bf, b2, w3_bf, gamma, beta)


@jax.jit
def torch_nn_forward(x_nchw, prepped_params):
    B = x_nchw.shape[0]
    x2d = x_nchw.reshape(B, -1).astype(jnp.float32)          # nn.Flatten on NCHW
    (w1_bf, b1, w2_bf, b2, w3_bf, gamma, beta) = prepped_params

    TB, n_steps = _pick_tile(B)
    B_pad = TB * n_steps
    if B_pad != B:
        x2d = jnp.pad(x2d, ((0, B_pad - B), (0, 0)))

    const = lambda shape: pl.BlockSpec(shape, lambda i: (0, 0))  # resident weights

    flops = 2 * B_pad * (IN_FEAT * H1 + H1 * H2 + H2 * OUT_PAD)
    bytes_accessed = (x2d.size * 4 + w1_bf.size * 2 + w2_bf.size * 2
                      + w3_bf.size * 2 + b1.size * 4 + b2.size * 4
                      + B_pad * OUT_PAD * 2)

    z_pad = pl.pallas_call(
        mlp_kernel,
        out_shape=jax.ShapeDtypeStruct((B_pad, OUT_PAD), jnp.bfloat16),
        grid_spec=pltpu.PrefetchScalarGridSpec(
            num_scalar_prefetch=0,
            grid=(n_steps,),
            in_specs=[
                pl.BlockSpec((TB, IN_FEAT), lambda i: (i, 0)),   # x: batch-tiled
                const((IN_FEAT, H1)), const((1, H1)),
                const((H1, H2)), const((1, H2)),
                const((H2, OUT_PAD)),
            ],
            out_specs=pl.BlockSpec((TB, OUT_PAD), lambda i: (i, 0)),
        ),
        compiler_params=pltpu.CompilerParams(
            dimension_semantics=("parallel",),        # megacore shard on v7x
            vmem_limit_bytes=32 * 1024 * 1024,        # safe on v5e/v6e/v7x
        ),
        cost_estimate=pl.CostEstimate(
            flops=flops, transcendentals=0, bytes_accessed=bytes_accessed),
    )(x2d, w1_bf, b1, w2_bf, b2, w3_bf)

    # Slice off padded rows BEFORE BatchNorm (padded rows have nonzero logits
    # from relu(bias) paths and must not contaminate the batch statistics).
    z = z_pad[:B, :OUT].astype(jnp.float32)

    # BatchNorm1d, training-mode batch statistics (biased variance) on the tiny
    # (B, 10) logits — negligible compute, done in plain JAX in f32.
    # TODO(synk): running_mean/running_var buffer updates (a training side effect)
    # are not replicated; the forward output matches PyTorch's train-mode BN.
    mean = jnp.mean(z, axis=0, keepdims=True)
    var = jnp.mean((z - mean) * (z - mean), axis=0, keepdims=True)
    scale = gamma * lax.rsqrt(var + BN_EPS)
    shift = beta - mean * scale
    return z * scale + shift


def init_params(key):
    # Deterministic init mimicking PyTorch nn.Linear default (uniform +/- 1/sqrt(fan_in)).
    ks = jax.random.split(key, 6)

    def linear(kw, kb, fan_in, fan_out):
        bound = 1.0 / jnp.sqrt(float(fan_in))
        w = jax.random.uniform(kw, (fan_in, fan_out), jnp.float32, -bound, bound)
        b = jax.random.uniform(kb, (1, fan_out), jnp.float32, -bound, bound)
        return w, b

    w1, b1 = linear(ks[0], ks[1], IN_FEAT, H1)
    w2, b2 = linear(ks[2], ks[3], H1, H2)
    w3, b3 = linear(ks[4], ks[5], H2, OUT)
    gamma = jnp.ones((1, OUT), jnp.float32)   # BatchNorm1d default weight
    beta = jnp.zeros((1, OUT), jnp.float32)   # BatchNorm1d default bias
    return (w1, b1, w2, b2, w3, b3, gamma, beta)


if __name__ == "__main__":
    key = jax.random.PRNGKey(0)
    k_x, k_p = jax.random.split(key)
    B = 8
    x = jax.random.normal(k_x, (B, 1, 28, 28), jnp.float32)  # NCHW, MNIST-like
    params = init_params(k_p)
    prepped = prepare_params(params)          # one-time bf16 cast + w3 pad

    y = torch_nn_forward(x, prepped)
    jax.block_until_ready(y)
    assert y.shape == (B, OUT) and y.dtype == jnp.float32
    assert bool(jnp.all(jnp.isfinite(y)))
    print("KERNEL_OK")
</pallas_src>

<mosaic_0001>
module attributes {stable_mosaic.version = 11 : i64} {
  func.func @mlp_kernel(%arg0: i32, %arg1: memref<16x784xf32, #tpu.memory_space<vmem>>, %arg2: memref<784x256xbf16, #tpu.memory_space<vmem>>, %arg3: memref<1x256xf32, #tpu.memory_space<vmem>>, %arg4: memref<256x128xbf16, #tpu.memory_space<vmem>>, %arg5: memref<1x128xf32, #tpu.memory_space<vmem>>, %arg6: memref<128x128xbf16, #tpu.memory_space<vmem>>, %arg7: memref<16x128xbf16, #tpu.memory_space<vmem>>) attributes {dimension_semantics = [#tpu.dimension_semantics<parallel>], iteration_bounds = array<i64: 1>, scalar_prefetch = 0 : i64, scratch_operands = 0 : i64, tpu.core_type = #tpu.core_type<tc>, window_params = [{transform_indices = @transform_0, window_bounds = array<i64: 16, 784>}, {pipeline_mode = #tpu.pipeline_mode<synchronous>, transform_indices = @transform_1, window_bounds = array<i64: 784, 256>}, {pipeline_mode = #tpu.pipeline_mode<synchronous>, transform_indices = @transform_2, window_bounds = array<i64: 1, 256>}, {pipeline_mode = #tpu.pipeline_mode<synchronous>, transform_indices = @transform_3, window_bounds = array<i64: 256, 128>}, {pipeline_mode = #tpu.pipeline_mode<synchronous>, transform_indices = @transform_4, window_bounds = array<i64: 1, 128>}, {pipeline_mode = #tpu.pipeline_mode<synchronous>, transform_indices = @transform_5, window_bounds = array<i64: 128, 128>}, {transform_indices = @transform_6, window_bounds = array<i64: 16, 128>}]} {
    %c0 = arith.constant 0 : index
    %c0_0 = arith.constant 0 : index
    %0 = vector.load %arg1[%c0, %c0_0] : memref<16x784xf32, #tpu.memory_space<vmem>>, vector<16x784xf32>
    %1 = arith.truncf %0 : vector<16x784xf32> to vector<16x784xbf16>
    %c0_1 = arith.constant 0 : index
    %c0_2 = arith.constant 0 : index
    %2 = vector.load %arg2[%c0_1, %c0_2] : memref<784x256xbf16, #tpu.memory_space<vmem>>, vector<784x256xbf16>
    %cst = arith.constant dense<0.000000e+00> : vector<16x256xf32>
    %3 = tpu.matmul %1, %2, %cst {dimension_numbers = #tpu.dot_dimension_numbers<[1], [0], [0], [1], [0, 0, 1, 1], [], []>} : vector<16x784xbf16>, vector<784x256xbf16>, vector<16x256xf32> -> vector<16x256xf32>
    %c0_3 = arith.constant 0 : index
    %c0_4 = arith.constant 0 : index
    %4 = vector.load %arg3[%c0_3, %c0_4] : memref<1x256xf32, #tpu.memory_space<vmem>>, vector<1x256xf32>
    %5 = vector.broadcast %4 : vector<1x256xf32> to vector<16x256xf32>
    %6 = arith.addf %3, %5 : vector<16x256xf32>
    %cst_5 = arith.constant 0.000000e+00 : f32
    %7 = vector.broadcast %cst_5 : f32 to vector<16x256xf32>
    %8 = arith.maximumf %6, %7 : vector<16x256xf32>
    %9 = arith.truncf %8 : vector<16x256xf32> to vector<16x256xbf16>
    %c0_6 = arith.constant 0 : index
    %c0_7 = arith.constant 0 : index
    %10 = vector.load %arg4[%c0_6, %c0_7] : memref<256x128xbf16, #tpu.memory_space<vmem>>, vector<256x128xbf16>
    %cst_8 = arith.constant dense<0.000000e+00> : vector<16x128xf32>
    %11 = tpu.matmul %9, %10, %cst_8 {dimension_numbers = #tpu.dot_dimension_numbers<[1], [0], [0], [1], [0, 0, 1, 1], [], []>} : vector<16x256xbf16>, vector<256x128xbf16>, vector<16x128xf32> -> vector<16x128xf32>
    %c0_9 = arith.constant 0 : index
    %c0_10 = arith.constant 0 : index
    %12 = vector.load %arg5[%c0_9, %c0_10] : memref<1x128xf32, #tpu.memory_space<vmem>>, vector<1x128xf32>
    %13 = vector.broadcast %12 : vector<1x128xf32> to vector<16x128xf32>
    %14 = arith.addf %11, %13 : vector<16x128xf32>
    %cst_11 = arith.constant 0.000000e+00 : f32
    %15 = vector.broadcast %cst_11 : f32 to vector<16x128xf32>
    %16 = arith.maximumf %14, %15 : vector<16x128xf32>
    %17 = arith.truncf %16 : vector<16x128xf32> to vector<16x128xbf16>
    %c0_12 = arith.constant 0 : index
    %c0_13 = arith.constant 0 : index
    %18 = vector.load %arg6[%c0_12, %c0_13] : memref<128x128xbf16, #tpu.memory_space<vmem>>, vector<128x128xbf16>
    %cst_14 = arith.constant dense<0.000000e+00> : vector<16x128xf32>
    %19 = tpu.matmul %17, %18, %cst_14 {dimension_numbers = #tpu.dot_dimension_numbers<[1], [0], [0], [1], [0, 0, 1, 1], [], []>} : vector<16x128xbf16>, vector<128x128xbf16>, vector<16x128xf32> -> vector<16x128xf32>
    %20 = arith.truncf %19 : vector<16x128xf32> to vector<16x128xbf16>
    %c0_15 = arith.constant 0 : index
    %c0_16 = arith.constant 0 : index
    %21 = vector.load %arg7[%c0_15, %c0_16] : memref<16x128xbf16, #tpu.memory_space<vmem>>, vector<16x128xbf16>
    tpu.vector_store %arg7[%c0_15, %c0_16], %20 {strides = array<i32>} : memref<16x128xbf16, #tpu.memory_space<vmem>>, vector<16x128xbf16>,
    return
  }
  func.func @transform_0(%arg0: i32) -> (i32, i32) {
    %c0_i32 = arith.constant 0 : i32
    %c0_i32_0 = arith.constant 0 : i32
    return %arg0, %c0_i32 : i32, i32
  }
  func.func @transform_1(%arg0: i32) -> (i32, i32) {
    %c0_i32 = arith.constant 0 : i32
    %c0_i32_0 = arith.constant 0 : i32
    %c0_i32_1 = arith.constant 0 : i32
    return %c0_i32, %c0_i32_0 : i32, i32
  }
  func.func @transform_2(%arg0: i32) -> (i32, i32) {
    %c0_i32 = arith.constant 0 : i32
    %c0_i32_0 = arith.constant 0 : i32
    %c0_i32_1 = arith.constant 0 : i32
    return %c0_i32, %c0_i32_0 : i32, i32
  }
  func.func @transform_3(%arg0: i32) -> (i32, i32) {
    %c0_i32 = arith.constant 0 : i32
    %c0_i32_0 = arith.constant 0 : i32
    %c0_i32_1 = arith.constant 0 : i32
    return %c0_i32, %c0_i32_0 : i32, i32
  }
  func.func @transform_4(%arg0: i32) -> (i32, i32) {
    %c0_i32 = arith.constant 0 : i32
    %c0_i32_0 = arith.constant 0 : i32
    %c0_i32_1 = arith.constant 0 : i32
    return %c0_i32, %c0_i32_0 : i32, i32
  }
  func.func @transform_5(%arg0: i32) -> (i32, i32) {
    %c0_i32 = arith.constant 0 : i32
    %c0_i32_0 = arith.constant 0 : i32
    %c0_i32_1 = arith.constant 0 : i32
    return %c0_i32, %c0_i32_0 : i32, i32
  }
  func.func @transform_6(%arg0: i32) -> (i32, i32) {
    %c0_i32 = arith.constant 0 : i32
    %c0_i32_0 = arith.constant 0 : i32
    return %arg0, %c0_i32 : i32, i32
  }
}

</mosaic_0001>

<bundles_post_ra>
// kernel: torch_nn_forward.1
= control target key start
LH: loop header
LB: loop body
LE: loop exit
PB: predicated region body
PF: predicated region fallthrough
CT: control target
= control target key end

     0   :  { %11 = vsyncpa [#allocation3], 0  ;;  %s1541_s21 = smov [#allocation2]   ;;  %s1987_s0 = inlined_call_operand.vmem [shape: f32[16,784], index: 0, kind: input, shape index: {}]   ;;  %s1988_s1 = inlined_call_operand.vmem [shape: bf16[784,256], index: 1, kind: input, shape index: {}]   ;;  %s1989_s2 = inlined_call_operand.vmem [shape: f32[1,256], index: 2, kind: input, shape index: {}]   ;;  %s1990_s3 = inlined_call_operand.vmem [shape: bf16[256,128], index: 3, kind: input, shape index: {}]   ;;  %s1991_s4 = inlined_call_operand.vmem [shape: f32[1,128], index: 4, kind: input, shape index: {}]   ;;  %s1992_s5 = inlined_call_operand.hbm [shape: bf16[128,128], index: 5, kind: input, shape index: {}]   ;;  %s1993_s6 = inlined_call_operand.vmem [shape: bf16[16,128], index: 6, kind: output, shape index: {}]  }
   0x1   :  { %s27_s22 = sshll.u32 %s1541_s21, 4  ;;  %s1517_s25 = scalar_lea.hbm %s1992_s5, 1024  ;;  %s28_s22 = int_to_ptr.vmem [resolvable:$true] %s27_s22 }
   0x2   :  { %p1518_p0 = scmp.ne.s32.totalorder %s1992_s5, %s1517_s25  ;;  %p1521_p1 = scmp.lt.u32.totalorder %s1517_s25, %s1992_s5 }
   0x4   :  { %p1523_p2 = pnand %p1521_p1, %p1518_p0 }
   0x6   :  { %1526 = shalt.err (!%p1523_p2)
}
   0x7   :  { %s1527_s30 = scalar_lea.vmem %s28_s22, 1024  ;;  %p1532_p4 = scmp.lt.s32.totalorder %s28_s22, %s28_s22 }
   0x8   :  { %p1528_p3 = scmp.ne.s32.totalorder %s28_s22, %s1527_s30  ;;  %p1533_p5 = scmp.lt.s32.totalorder %s1527_s30, %s1527_s30 }
   0xa   :  { %p1534_p6 = por %p1533_p5, %p1532_p4 }
   0xc   :  { %p1535_p7 = pnand %p1534_p6, %p1528_p3 }
   0xe   :  { %1538 = shalt.err (!%p1535_p7)
}
   0xf   :  { %s1542_s7 = smov 64   ;;  %s1543_s8 = smov 4  }
  0x10   :  { %33 = dma.hbm_to_vmem [thread:$0]  %s1992_s5, 1024, %s28_s22, [#allocation3], %s1542_s7, %s1542_s7, %s1543_s8  }
  0x11   :  { %1539 = dma.done.wait [#allocation3], 1024  }
  0x12   :  { %1540 = vsyncadd [#allocation3], 4294966272  ;;  %v1346_v0 = vld [vmem:[%s1988_s1 + $0x104] ss:$8 sps:$4 sm:$0xff]   ;;  %v1348_v1 = vld [vmem:[%s1988_s1 + $0x100] ss:$8 sps:$4 sm:$0xff]  }
  0x13   :  { %706 = vmatprep.subr.bf16.mxu0 %v1346_v0  ;;  %v1349_v2 = vld [vmem:[%s1988_s1 + $0x114] ss:$8 sps:$4 sm:$0xff]   ;;  %v1351_v3 = vld [vmem:[%s1988_s1 + $0x110] ss:$8 sps:$4 sm:$0xff]   ;;  %v1352_v4 = vld [vmem:[%s1988_s1 + $0x124] ss:$8 sps:$4 sm:$0xff]  }
  0x14   :  { %707 = vmatpush1.bf16.msra.mxu0 %v1348_v1  ;;  %v1354_v5 = vld [vmem:[%s1988_s1 + $0x120] ss:$8 sps:$4 sm:$0xff]   ;;  %v1355_v6 = vld [vmem:[%s1988_s1 + $0x134] ss:$8 sps:$4 sm:$0xff]   ;;  %v1357_v7 = vld [vmem:[%s1988_s1 + $0x130] ss:$8 sps:$4 sm:$0xff]  }
  0x15   :  { %708 = vmatprep.subr.bf16.mxu0 %v1349_v2  ;;  %v1358_v8 = vld [vmem:[%s1988_s1 + $0x144] ss:$8 sps:$4 sm:$0xff]   ;;  %v1360_v9 = vld [vmem:[%s1988_s1 + $0x140] ss:$8 sps:$4 sm:$0xff]   ;;  %v1361_v10 = vld [vmem:[%s1988_s1 + $0x154] ss:$8 sps:$4 sm:$0xff]  }
  0x16   :  { %v1363_v11 = vld [vmem:[%s1988_s1 + $0x150] ss:$8 sps:$4 sm:$0xff]   ;;  %v1364_v12 = vld [vmem:[%s1988_s1 + $0x164] ss:$8 sps:$4 sm:$0xff]   ;;  %v1366_v16 = vld [vmem:[%s1988_s1 + $0x160] ss:$8 sps:$4 sm:$0xff]  }
  0x17   :  { %v41_v13 = vld [vmem:[%s1987_s0 + $0x18] sm:$0xff]  ;;  %v48_v14 = vld [vmem:[%s1987_s0 + $0x50] sm:$0xff]  ;;  %v1400_v18 = vld [vmem:[%s1988_s1 + $0x4] ss:$8 sps:$4 sm:$0xff]   ;;  %vm659_vm0 = vcmask 130048   ;;  %vm1546_vm1 = vmmov 0  }
  0x18   :  { %709 = vmatpush1.bf16.msra.mxu0 %v1351_v3  ;;  %v55_v15 = vpack.c.bf16 %v48_v14, %v41_v13  ;;  %v1367_v17 = vld [vmem:[%s1988_s1 + $0x174] ss:$8 sps:$4 sm:$0xff]   ;;  %v1369_v19 = vld [vmem:[%s1988_s1 + $0x170] ss:$8 sps:$4 sm:$0xff]   ;;  %v1370_v20 = vld [vmem:[%s1988_s1 + $0x184] ss:$8 sps:$4 sm:$0xff]   ;;  %663 = vmatprep.subr.bf16.mxu1 %v1400_v18 }
  0x19   :  { %710 = vmatprep.subr.bf16.mxu0 %v1352_v4  ;;  %v1405_v21 = vld [vmem:[%s1988_s1] ss:$8 sps:$4 sm:$0xff]   ;;  %v1406_v22 = vld [vmem:[%s1988_s1 + $0x14] ss:$8 sps:$4 sm:$0xff]   ;;  %v1411_v24 = vld [vmem:[%s1988_s1 + $0x10] ss:$8 sps:$4 sm:$0xff]  }
  0x1a   :  { %738 = vmatprep.mubr.bf16.mxu0 %v55_v15  ;;  %664 = vmatpush1.bf16.msra.mxu1 %v1405_v21  ;;  %v1372_v23 = vld [vmem:[%s1988_s1 + $0x180] ss:$8 sps:$4 sm:$0xff]   ;;  %v1412_v25 = vld [vmem:[%s1988_s1 + $0x24] ss:$8 sps:$4 sm:$0xff]   ;;  %v1373_v26 = vld [vmem:[%s1988_s1 + $0x194] ss:$8 sps:$4 sm:$0xff]  }
  0x1b   :  { %665 = vmatprep.subr.bf16.mxu1 %v1406_v22  ;;  %v1417_v27 = vld [vmem:[%s1988_s1 + $0x20] ss:$8 sps:$4 sm:$0xff]   ;;  %v1418_v28 = vld [vmem:[%s1988_s1 + $0x34] ss:$8 sps:$4 sm:$0xff]   ;;  %v1375_v29 = vld [vmem:[%s1988_s1 + $0x190] ss:$8 sps:$4 sm:$0xff]  }
  0x1c   :  { %711 = vmatpush1.bf16.msra.mxu0 %v1354_v5  ;;  %v1376_v30 = vld [vmem:[%s1988_s1 + $0x1a4] ss:$8 sps:$4 sm:$0xff]   ;;  %v1423_v31 = vld [vmem:[%s1988_s1 + $0x30] ss:$8 sps:$4 sm:$0xff]   ;;  %v1378_v33 = vld [vmem:[%s1988_s1 + $0x1a0] ss:$8 sps:$4 sm:$0xff]  }
  0x1d   :  { %712 = vmatprep.subr.bf16.mxu0 %v1355_v6  ;;  %v1424_v32 = vld [vmem:[%s1988_s1 + $0x44] ss:$8 sps:$4 sm:$0xff]   ;;  %v1379_v34 = vld [vmem:[%s1988_s1 + $0x1b4] ss:$8 sps:$4 sm:$0xff]   ;;  %v1429_v35 = vld [vmem:[%s1988_s1 + $0x40] ss:$8 sps:$4 sm:$0xff]  }
  0x1e   :  { %666 = vmatpush1.bf16.msra.mxu1 %v1411_v24  ;;  %v1430_v36 = vld [vmem:[%s1988_s1 + $0x54] ss:$8 sps:$4 sm:$0xff]   ;;  %v1381_v37 = vld [vmem:[%s1988_s1 + $0x1b0] ss:$8 sps:$4 sm:$0xff]   ;;  %v1382_v38 = vld [vmem:[%s1988_s1 + $0x1c4] ss:$8 sps:$4 sm:$0xff]  }
  0x1f   :  { %667 = vmatprep.subr.bf16.mxu1 %v1412_v25  ;;  %v1435_v39 = vld [vmem:[%s1988_s1 + $0x50] ss:$8 sps:$4 sm:$0xff]   ;;  %v1436_v40 = vld [vmem:[%s1988_s1 + $0x64] ss:$8 sps:$4 sm:$0xff]   ;;  %v1384_v41 = vld [vmem:[%s1988_s1 + $0x1c0] ss:$8 sps:$4 sm:$0xff]  }
  0x20   :  { %713 = vmatpush1.bf16.msra.mxu0 %v1357_v7  ;;  %v1385_v42 = vld [vmem:[%s1988_s1 + $0x1d4] ss:$8 sps:$4 sm:$0xff]   ;;  %v1441_v43 = vld [vmem:[%s1988_s1 + $0x60] ss:$8 sps:$4 sm:$0xff]   ;;  %v1387_v45 = vld [vmem:[%s1988_s1 + $0x1d0] ss:$8 sps:$4 sm:$0xff]  }
  0x21   :  { %714 = vmatprep.subr.bf16.mxu0 %v1358_v8  ;;  %v1442_v44 = vld [vmem:[%s1988_s1 + $0x74] ss:$8 sps:$4 sm:$0xff]   ;;  %v1388_v46 = vld [vmem:[%s1988_s1 + $0x1e4] ss:$8 sps:$4 sm:$0xff]   ;;  %v1447_v47 = vld [vmem:[%s1988_s1 + $0x70] ss:$8 sps:$4 sm:$0xff]  }
  0x22   :  { %668 = vmatpush1.bf16.msra.mxu1 %v1417_v27  ;;  %v1448_v48 = vld [vmem:[%s1988_s1 + $0x84] ss:$8 sps:$4 sm:$0xff]   ;;  %v1390_v49 = vld [vmem:[%s1988_s1 + $0x1e0] ss:$8 sps:$4 sm:$0xff]   ;;  %v1391_v50 = vld [vmem:[%s1988_s1 + $0x1f4] ss:$8 sps:$4 sm:$0xff]  }
  0x23   :  { %669 = vmatprep.subr.bf16.mxu1 %v1418_v28  ;;  %v1453_v51 = vld [vmem:[%s1988_s1 + $0x80] ss:$8 sps:$4 sm:$0xff]   ;;  %v1454_v52 = vld [vmem:[%s1988_s1 + $0x94] ss:$8 sps:$4 sm:$0xff]   ;;  %v1393_v53 = vld [vmem:[%s1988_s1 + $0x1f0] ss:$8 sps:$4 sm:$0xff]  }
  0x24   :  { %715 = vmatpush1.bf16.msra.mxu0 %v1360_v9  ;;  %v40_v54 = vld [vmem:[%s1987_s0 + $0x10] sm:$0xff]  ;;  %v47_v55 = vld [vmem:[%s1987_s0 + $0x48] sm:$0xff]  ;;  %v50_v62 = vld [vmem:[%s1987_s0 + $0x60] sm:$0xff] }
  0x25   :  { %716 = vmatprep.subr.bf16.mxu0 %v1361_v10  ;;  %v1396_v56 = vld [vmem:[%s1988_s1 + $0x204] ss:$8 sps:$4 sm:$0xff]   ;;  %v1459_v57 = vld [vmem:[%s1988_s1 + $0x90] ss:$8 sps:$4 sm:$0xff]   ;;  %v1394_v58 = vld [vmem:[%s1988_s1 + $0x200] ss:$8 sps:$4 sm:$0xff]   ;;  %v54_v59 = vpack.c.bf16 %v47_v55, %v40_v54 }
  0x26   :  { %670 = vmatpush1.bf16.msra.mxu1 %v1423_v31  ;;  %v1460_v60 = vld [vmem:[%s1988_s1 + $0xa4] ss:$8 sps:$4 sm:$0xff]   ;;  %v1399_v63 = vld [vmem:[%s1988_s1 + $0x214] ss:$8 sps:$4 sm:$0xff]   ;;  %v1465_v1 = vld [vmem:[%s1988_s1 + $0xa0] ss:$8 sps:$4 sm:$0xff]  }
  0x27   :  { %671 = vmatprep.subr.bf16.mxu1 %v1424_v32  ;;  %v43_v61 = vld [vmem:[%s1987_s0 + $0x28] sm:$0xff]  ;;  %v1466_v2 = vld [vmem:[%s1988_s1 + $0xb4] ss:$8 sps:$4 sm:$0xff]   ;;  %v1397_v3 = vld [vmem:[%s1988_s1 + $0x210] ss:$8 sps:$4 sm:$0xff]  }
  0x28   :  { %717 = vmatpush1.bf16.msra.mxu0 %v1363_v11  ;;  %v57_v0 = vpack.c.bf16 %v50_v62, %v43_v61  ;;  %v1404_v4 = vld [vmem:[%s1988_s1 + $0x224] ss:$8 sps:$4 sm:$0xff]   ;;  %v1471_v7 = vld [vmem:[%s1988_s1 + $0xb0] ss:$8 sps:$4 sm:$0xff]   ;;  %v1402_v10 = vld [vmem:[%s1988_s1 + $0x220] ss:$8 sps:$4 sm:$0xff]  }
  0x29   :  { %718 = vmatprep.subr.bf16.mxu0 %v1364_v12  ;;  %v39_v5 = vld [vmem:[%s1987_s0 + $0x8] sm:$0xff]  ;;  %v46_v6 = vld [vmem:[%s1987_s0 + $0x40] sm:$0xff]  ;;  %v1410_v11 = vld [vmem:[%s1988_s1 + $0x234] ss:$8 sps:$4 sm:$0xff]   ;;  %v1544_v61 = vmov 0  }
  0x2a   :  { %672 = vmatpush1.bf16.msra.mxu1 %v1429_v35  ;;  %v53_v8 = vpack.c.bf16 %v46_v6, %v39_v5  ;;  %v1472_v9 = vld [vmem:[%s1988_s1 + $0xc4] ss:$8 sps:$4 sm:$0xff]   ;;  %v1477_v12 = vld [vmem:[%s1988_s1 + $0xc0] ss:$8 sps:$4 sm:$0xff]   ;;  %v1478_v13 = vld [vmem:[%s1988_s1 + $0xd4] ss:$8 sps:$4 sm:$0xff]  }
  0x2b   :  { %673 = vmatprep.subr.bf16.mxu1 %v1430_v36  ;;  %v1408_v14 = vld [vmem:[%s1988_s1 + $0x230] ss:$8 sps:$4 sm:$0xff]   ;;  %v1416_v15 = vld [vmem:[%s1988_s1 + $0x244] ss:$8 sps:$4 sm:$0xff]   ;;  %v1422_v18 = vld [vmem:[%s1988_s1 + $0x254] ss:$8 sps:$4 sm:$0xff]  }
  0x2c   :  { %719 = vmatpush1.bf16.msra.mxu0 %v1366_v16  ;;  %695 = vmatprep.mubr.bf16.mxu1 %v53_v8  ;;  %v1414_v16 = vld [vmem:[%s1988_s1 + $0x240] ss:$8 sps:$4 sm:$0xff]   ;;  %v1490_v21 = vld [vmem:[%s1988_s1 + $0xf4] ss:$8 sps:$4 sm:$0xff]   ;;  %v1420_v22 = vld [vmem:[%s1988_s1 + $0x250] ss:$8 sps:$4 sm:$0xff]  }
  0x2d   :  { %720 = vmatprep.subr.bf16.mxu0 %v1367_v17  ;;  %v1483_v17 = vld [vmem:[%s1988_s1 + $0xd0] ss:$8 sps:$4 sm:$0xff]   ;;  %v38_v25 = vld [vmem:[%s1987_s0] sm:$0xff]  ;;  %v1495_v32 = vld [vmem:[%s1990_s3 + $0x48] sm:$0xff]   ;;  %v1545_v8 = vmov 0.0  }
  0x2e   :  { %674 = vmatpush1.bf16.msra.mxu1 %v1435_v39  ;;  %v1492_v24 = vld [vmem:[%s1988_s1 + $0xf0] ss:$8 sps:$4 sm:$0xff]   ;;  %v1493_v27 = vld [vmem:[%s1990_s3 + $0x40] sm:$0xff]   ;;  %v1496_v35 = vld [vmem:[%s1990_s3 + $0x8] sm:$0xff]  }
  0x2f   :  { %675 = vmatprep.subr.bf16.mxu1 %v1436_v40  ;;  %v1426_v28 = vld [vmem:[%s1988_s1 + $0x260] ss:$8 sps:$4 sm:$0xff]   ;;  %v1497_v36 = vld [vmem:[%s1990_s3 + $0x50] sm:$0xff]   ;;  %v1499_v40 = vld [vmem:[%s1990_s3 + $0x58] sm:$0xff]  }
  0x30   :  { %721 = vmatpush1.bf16.msra.mxu0 %v1369_v19  ;;  %v1484_v19 = vld [vmem:[%s1988_s1 + $0xe4] ss:$8 sps:$4 sm:$0xff]   ;;  %v1498_v39 = vld [vmem:[%s1990_s3 + $0x10] sm:$0xff]   ;;  %v1507_v6 = vld [vmem:[%s1990_s3 + $0x78] sm:$0xff]  }
  0x31   :  { %722 = vmatprep.subr.bf16.mxu0 %v1370_v20  ;;  %v1489_v20 = vld [vmem:[%s1988_s1 + $0xe0] ss:$8 sps:$4 sm:$0xff]   ;;  %v1482_v54 = vld [vmem:[%s1988_s1 + $0x2f4] ss:$8 sps:$4 sm:$0xff]   ;;  %v1480_v55 = vld [vmem:[%s1988_s1 + $0x2f0] ss:$8 sps:$4 sm:$0xff]  }
  0x32   :  { %676 = vmatpush1.bf16.msra.mxu1 %v1441_v43  ;;  %v1494_v31 = vld [vmem:[%s1990_s3] sm:$0xff]   ;;  %v1500_v43 = vld [vmem:[%s1990_s3 + $0x18] sm:$0xff]   ;;  %v44_v62 = vld [vmem:[%s1987_s0 + $0x30] sm:$0xff] }
  0x33   :  { %677 = vmatprep.subr.bf16.mxu1 %v1442_v44  ;;  %v1501_v44 = vld [vmem:[%s1990_s3 + $0x60] sm:$0xff]   ;;  %v1506_v5 = vld [vmem:[%s1990_s3 + $0x30] sm:$0xff]  }
  0x34   :  { %723 = vmatpush1.bf16.msra.mxu0 %v1372_v23  ;;  %v1428_v23 = vld [vmem:[%s1988_s1 + $0x264] ss:$8 sps:$4 sm:$0xff]  }
  0x35   :  { %724 = vmatprep.subr.bf16.mxu0 %v1373_v26  ;;  %v45_v26 = vld [vmem:[%s1987_s0 + $0x38] sm:$0xff] }
  0x36   :  { %678 = vmatpush1.bf16.msra.mxu1 %v1447_v47  ;;  %v1456_v47 = vld [vmem:[%s1988_s1 + $0x2b0] ss:$8 sps:$4 sm:$0xff]  }
  0x37   :  { %679 = vmatprep.subr.bf16.mxu1 %v1448_v48  ;;  %v1464_v48 = vld [vmem:[%s1988_s1 + $0x2c4] ss:$8 sps:$4 sm:$0xff]  }
  0x38   :  { %725 = vmatpush1.bf16.msra.mxu0 %v1375_v29  ;;  %v1434_v29 = vld [vmem:[%s1988_s1 + $0x274] ss:$8 sps:$4 sm:$0xff]  }
  0x39   :  { %726 = vmatprep.subr.bf16.mxu0 %v1376_v30  ;;  %v52_v30 = vpack.c.bf16 %v45_v26, %v38_v25 }
  0x3a   :  { %680 = vmatpush1.bf16.msra.mxu1 %v1453_v51  ;;  %v1468_v51 = vld [vmem:[%s1988_s1 + $0x2d0] ss:$8 sps:$4 sm:$0xff]  }
  0x3b   :  { %681 = vmatprep.subr.bf16.mxu1 %v1454_v52  ;;  %v1476_v52 = vld [vmem:[%s1988_s1 + $0x2e4] ss:$8 sps:$4 sm:$0xff]  }
  0x3c   :  { %727 = vmatpush1.bf16.msra.mxu0 %v1378_v33  ;;  %v1432_v33 = vld [vmem:[%s1988_s1 + $0x270] ss:$8 sps:$4 sm:$0xff]  }
  0x3d   :  { %728 = vmatprep.subr.bf16.mxu0 %v1379_v34  ;;  %v1440_v34 = vld [vmem:[%s1988_s1 + $0x284] ss:$8 sps:$4 sm:$0xff]  }
  0x3e   :  { %682 = vmatpush1.bf16.msra.mxu1 %v1459_v57  ;;  %v49_v57 = vld [vmem:[%s1987_s0 + $0x58] sm:$0xff] }
  0x3f   :  { %683 = vmatprep.subr.bf16.mxu1 %v1460_v60  ;;  %v1486_v60 = vld [vmem:[%s1988_s1 + $0x300] ss:$8 sps:$4 sm:$0xff]  }
  0x40   :  { %729 = vmatpush1.bf16.msra.mxu0 %v1381_v37  ;;  %v1438_v37 = vld [vmem:[%s1988_s1 + $0x280] ss:$8 sps:$4 sm:$0xff]  }
  0x41   :  { %730 = vmatprep.subr.bf16.mxu0 %v1382_v38  ;;  %v1446_v38 = vld [vmem:[%s1988_s1 + $0x294] ss:$8 sps:$4 sm:$0xff]  }
  0x42   :  { %684 = vmatpush1.bf16.msra.mxu1 %v1465_v1  ;;  %v1502_v1 = vld [vmem:[%s1990_s3 + $0x20] sm:$0xff]  }
  0x43   :  { %685 = vmatprep.subr.bf16.mxu1 %v1466_v2  ;;  %v1503_v2 = vld [vmem:[%s1990_s3 + $0x68] sm:$0xff]  }
  0x44   :  { %731 = vmatpush1.bf16.msra.mxu0 %v1384_v41  ;;  %v1444_v41 = vld [vmem:[%s1988_s1 + $0x290] ss:$8 sps:$4 sm:$0xff]  }
  0x45   :  { %732 = vmatprep.subr.bf16.mxu0 %v1385_v42  ;;  %v1452_v42 = vld [vmem:[%s1988_s1 + $0x2a4] ss:$8 sps:$4 sm:$0xff]  }
  0x46   :  { %686 = vmatpush1.bf16.msra.mxu1 %v1471_v7  ;;  %v1508_v7 = vld [vmem:[%s1990_s3 + $0x38] sm:$0xff]  }
  0x47   :  { %687 = vmatprep.subr.bf16.mxu1 %v1472_v9 }
  0x48   :  { %733 = vmatpush1.bf16.msra.mxu0 %v1387_v45  ;;  %v1450_v45 = vld [vmem:[%s1988_s1 + $0x2a0] ss:$8 sps:$4 sm:$0xff]  }
  0x49   :  { %734 = vmatprep.subr.bf16.mxu0 %v1388_v46  ;;  %v1458_v46 = vld [vmem:[%s1988_s1 + $0x2b4] ss:$8 sps:$4 sm:$0xff]  }
  0x4a   :  { %688 = vmatpush1.bf16.msra.mxu1 %v1477_v12 }
  0x4b   :  { %689 = vmatprep.subr.bf16.mxu1 %v1478_v13  ;;  %v159_v13 = vlaneseq }
  0x4c   :  { %735 = vmatpush1.bf16.msra.mxu0 %v1390_v49  ;;  %v1462_v49 = vld [vmem:[%s1988_s1 + $0x2c0] ss:$8 sps:$4 sm:$0xff]  }
  0x4d   :  { %736 = vmatprep.subr.bf16.mxu0 %v1391_v50  ;;  %v1470_v50 = vld [vmem:[%s1988_s1 + $0x2d4] ss:$8 sps:$4 sm:$0xff]  }
  0x4e   :  { %690 = vmatpush1.bf16.msra.mxu1 %v1483_v17 }
  0x4f   :  { %691 = vmatprep.subr.bf16.mxu1 %v1484_v19 }
  0x50   :  { %737 = vmatpush1.bf16.msra.mxu0 %v1393_v53  ;;  %v1474_v53 = vld [vmem:[%s1988_s1 + $0x2e0] ss:$8 sps:$4 sm:$0xff]  }
  0x51   :  { %749 = vmatprep.subr.bf16.mxu0 %v1396_v56  ;;  %v42_v56 = vld [vmem:[%s1987_s0 + $0x20] sm:$0xff] }
  0x52   :  { %692 = vmatpush1.bf16.msra.mxu1 %v1489_v20 }
  0x53   :  { %739 = vmatmul.mubr.bf16.vlgmr.msra.gmra.mrb[0].mxu0 %v54_v59  ;;  %693 = vmatprep.subr.bf16.mxu1 %v1490_v21  ;;  %v56_v59 = vpack.c.bf16 %v49_v57, %v42_v56 }
  0x54   :  { %750 = vmatpush1.bf16.msra.mxu0 %v1394_v58  ;;  %781 = vmatprep.mubr.bf16.mxu0 %v57_v0  ;;  %v1488_v58 = vld [vmem:[%s1988_s1 + $0x304] ss:$8 sps:$4 sm:$0xff]  }
  0x55   :  { %751 = vmatprep.subr.bf16.mxu0 %v1399_v63  ;;  %v51_v63 = vld [vmem:[%s1987_s0 + $0x68] sm:$0xff] }
  0x56   :  { %694 = vmatpush1.bf16.msra.mxu1 %v1492_v24  ;;  %v58_v0 = vpack.c.bf16 %v51_v63, %v44_v62 }
  0x57   :  { %1273 = vmatprep.subr.bf16.mxu1 %v1493_v27 }
  0x58   :  { %752 = vmatpush1.bf16.msra.mxu0 %v1397_v3  ;;  %v1504_v3 = vld [vmem:[%s1990_s3 + $0x28] sm:$0xff]  }
  0x59   :  { %753 = vmatprep.subr.bf16.mxu0 %v1404_v4  ;;  %696 = vmatmul.mubr.bf16.vlgmr.msra.gmra.mrb[0].mxu1 %v52_v30  ;;  %v1505_v4 = vld [vmem:[%s1990_s3 + $0x70] sm:$0xff]  }
  0x5a   :  { %1274 = vmatpush3.bf16.msra.mxu1 %v1494_v31 }
  0x5b   :  { %1275 = vmatprep.subr.bf16.mxu1 %v1495_v32 }
  0x5c   :  { %754 = vmatpush1.bf16.msra.mxu0 %v1402_v10 }
  0x5d   :  { %755 = vmatprep.subr.bf16.mxu0 %v1410_v11 }
  0x5e   :  { %1276 = vmatpush3.bf16.msra.mxu1 %v1496_v35 }
  0x5f   :  { %1277 = vmatprep.subr.bf16.mxu1 %v1497_v36 }
  0x60   :  { %756 = vmatpush1.bf16.msra.mxu0 %v1408_v14  ;;  %v160_v14 = vshrl.u32 %v159_v13, 7 }
  0x61   :  { %757 = vmatprep.subr.bf16.mxu0 %v1416_v15 }
  0x62   :  { %1278 = vmatpush3.bf16.msra.mxu1 %v1498_v39  ;;  %v161_v15 = vsub.s32 0, %v160_v14  ;;  %v165_v17 = vsub.s32 1, %v160_v14  ;;  %v1510_v39 = vld [vmem:[#allocation2 + $0x8] sm:$0xff]  }
  0x63   :  { %1279 = vmatprep.subr.bf16.mxu1 %v1499_v40  ;;  %v1511_v40 = vld [vmem:[#allocation2 + $0x10] sm:$0xff]  }
  0x64   :  { %758 = vmatpush1.bf16.msra.mxu0 %v1414_v16  ;;  %v157_v16 = vld [vmem:[%s1989_s2] sm:$0x3] }
  0x65   :  { %759 = vmatprep.subr.bf16.mxu0 %v1422_v18  ;;  %v162_v18 = vrot.slane %v157_v16, %v161_v15  ;;  %v166_v19 = vrot.slane %v157_v16, %v165_v17 }
  0x66   :  { %1280 = vmatpush3.bf16.msra.mxu1 %v1500_v43  ;;  %v1514_v43 = vld [vmem:[#allocation2 + $0x28] sm:$0xff]  }
  0x67   :  { %1281 = vmatprep.subr.bf16.mxu1 %v1501_v44  ;;  %v1515_v44 = vld [vmem:[#allocation2 + $0x30] sm:$0xff]  }
  0x68   :  { %760 = vmatpush1.bf16.msra.mxu0 %v1420_v22 }
  0x69   :  { %761 = vmatprep.subr.bf16.mxu0 %v1428_v23 }
  0x6a   :  { %1282 = vmatpush3.bf16.msra.mxu1 %v1502_v1 }
  0x6b   :  { %1283 = vmatprep.subr.bf16.mxu1 %v1503_v2 }
  0x6c   :  { %762 = vmatpush1.bf16.msra.mxu0 %v1426_v28 }
  0x6d   :  { %763 = vmatprep.subr.bf16.mxu0 %v1434_v29 }
  0x6e   :  { %1284 = vmatpush3.bf16.msra.mxu1 %v1504_v3 }
  0x6f   :  { %1285 = vmatprep.subr.bf16.mxu1 %v1505_v4 }
  0x70   :  { %764 = vmatpush1.bf16.msra.mxu0 %v1432_v33 }
  0x71   :  { %765 = vmatprep.subr.bf16.mxu0 %v1440_v34 }
  0x72   :  { %1286 = vmatpush3.bf16.msra.mxu1 %v1506_v5 }
  0x73   :  { %1287 = vmatprep.subr.bf16.mxu1 %v1507_v6 }
  0x74   :  { %766 = vmatpush1.bf16.msra.mxu0 %v1438_v37 }
  0x75   :  { %767 = vmatprep.subr.bf16.mxu0 %v1446_v38  ;;  %v1509_v38 = vld [vmem:[#allocation2] sm:$0xff]  }
  0x76   :  { %1288 = vmatpush3.bf16.msra.mxu1 %v1508_v7 }
  0x77   :  { %1304 = vmatprep.subr.bf16.mxu1 %v1545_v8 }
  0x78   :  { %768 = vmatpush1.bf16.msra.mxu0 %v1444_v41  ;;  %v1512_v41 = vld [vmem:[#allocation2 + $0x18] sm:$0xff]  }
  0x79   :  { %769 = vmatprep.subr.bf16.mxu0 %v1452_v42  ;;  %v1513_v42 = vld [vmem:[#allocation2 + $0x20] sm:$0xff]  }
  0x7c   :  { %770 = vmatpush1.bf16.msra.mxu0 %v1450_v45  ;;  %v1516_v45 = vld [vmem:[#allocation2 + $0x38] sm:$0xff]  }
  0x7d   :  { %771 = vmatprep.subr.bf16.mxu0 %v1458_v46 }
  0x80   :  { %772 = vmatpush1.bf16.msra.mxu0 %v1456_v47  ;;  %v1239_v47 = vld [vmem:[%s1991_s4] ss:$0 sm:$0xff] }
  0x81   :  { %773 = vmatprep.subr.bf16.mxu0 %v1464_v48 }
  0x84   :  { %774 = vmatpush1.bf16.msra.mxu0 %v1462_v49 }
  0x85   :  { %775 = vmatprep.subr.bf16.mxu0 %v1470_v50 }
  0x88   :  { %776 = vmatpush1.bf16.msra.mxu0 %v1468_v51 }
  0x89   :  { %777 = vmatprep.subr.bf16.mxu0 %v1476_v52 }
  0x8c   :  { %778 = vmatpush1.bf16.msra.mxu0 %v1474_v53 }
  0x8d   :  { %779 = vmatprep.subr.bf16.mxu0 %v1482_v54 }
  0x90   :  { %780 = vmatpush1.bf16.msra.mxu0 %v1480_v55 }
  0x91   :  { %792 = vmatprep.subr.bf16.mxu0 %v1488_v58 }
  0x93   :  { %782 = vmatmul.mubr.bf16.vlgmr.msra.gmra.mrb[0].mxu0 %v56_v59 }
  0x94   :  { %793 = vmatpush1.bf16.msra.mxu0 %v1486_v60  ;;  %824 = vmatprep.mubr.bf16.mxu0 %v1544_v61 }
  0x9f   :  { %1238 = vmatmul.mubr.msk.bf16.vlgmr.msra.gmra.mrb[0].mxu0 %vm659_vm0, %v58_v0 }
 0x12c   :  { %v697_v9 = vpop.f32.mrb[0].mxu1 }
 0x12d   :  { %v699_v10 = vpop.f32.mrb[1].mxu1  ;;  %v698_v20 = vadd.f32 %v697_v9, %v162_v18 }
 0x12e   :  { %v701_v11 = vpop.f32.mrb[2].mxu1  ;;  %v700_v21 = vadd.f32 %v699_v10, %v166_v19 }
 0x12f   :  { %v703_v12 = vpop.f32.mrb[3].mxu1  ;;  %v702_v23 = vadd.f32 %v701_v11, %v162_v18 }
 0x130   :  { %v704_v26 = vadd.f32 %v703_v12, %v166_v19 }
 0x172   :  { %v826_v22 = vpop.f32.mrb[0].mxu0 }
 0x173   :  { %v1325_v24 = vadd.f32 %v826_v22, %v698_v20  ;;  %v828_v25 = vpop.f32.mrb[1].mxu0 }
 0x174   :  { %v1327_v27 = vadd.f32 %v828_v25, %v700_v21  ;;  %v830_v28 = vpop.f32.mrb[2].mxu0 }
 0x175   :  { %v1329_v29 = vadd.f32 %v830_v28, %v702_v23  ;;  %v832_v30 = vpop.f32.mrb[3].mxu0  ;;  %v835_v32 = vmax.f32 %v1325_v24, 0.0 }
 0x176   :  { %v1331_v31 = vadd.f32 %v832_v30, %v704_v26  ;;  %v836_v34 = vmax.f32 %v1327_v27, 0.0 }
 0x177   :  { %v837_v33 = vmax.f32 %v1329_v29, 0.0 }
 0x178   :  { %v838_v35 = vmax.f32 %v1331_v31, 0.0 }
 0x179   :  { %v839_v36 = vpack.c.bf16 %v837_v33, %v835_v32 }
 0x17a   :  { %v840_v37 = vpack.c.bf16 %v838_v35, %v836_v34 }
 0x17c   :  { %1008 = vmatprep.mubr.bf16.mxu1 %v840_v37 }
 0x17d   :  { %1009 = vmatmul.mubr.bf16.vlgmr.msra.gmra.mrb[4].mxu1 %v839_v36 }
 0x17e   :  { %1305 = vmatpush3.bf16.msra.mxu1 %v1509_v38  ;;  %1320 = vmatprep.mubr.msk.bf16.mxu1 %vm1546_vm1, %v1545_v8 }
 0x17f   :  { %1306 = vmatprep.subr.bf16.mxu1 %v1545_v8 }
 0x182   :  { %1307 = vmatpush3.bf16.msra.mxu1 %v1510_v39 }
 0x183   :  { %1308 = vmatprep.subr.bf16.mxu1 %v1545_v8 }
 0x186   :  { %1309 = vmatpush3.bf16.msra.mxu1 %v1511_v40 }
 0x187   :  { %1310 = vmatprep.subr.bf16.mxu1 %v1545_v8 }
 0x18a   :  { %1311 = vmatpush3.bf16.msra.mxu1 %v1512_v41 }
 0x18b   :  { %1312 = vmatprep.subr.bf16.mxu1 %v1545_v8 }
 0x18e   :  { %1313 = vmatpush3.bf16.msra.mxu1 %v1513_v42 }
 0x18f   :  { %1314 = vmatprep.subr.bf16.mxu1 %v1545_v8 }
 0x192   :  { %1315 = vmatpush3.bf16.msra.mxu1 %v1514_v43 }
 0x193   :  { %1316 = vmatprep.subr.bf16.mxu1 %v1545_v8 }
 0x196   :  { %1317 = vmatpush3.bf16.msra.mxu1 %v1515_v44 }
 0x197   :  { %1318 = vmatprep.subr.bf16.mxu1 %v1545_v8 }
 0x19a   :  { %1319 = vmatpush3.bf16.msra.mxu1 %v1516_v45 }
 0x250   :  { %v1289_v46 = vpop.f32.mrb[4].mxu1 }
 0x251   :  { %v1290_v48 = vpop.f32.mrb[5].mxu1 }
 0x252   :  { %v1291_v49 = vadd.f32 %v1290_v48, %v1289_v46  ;;  %v1292_v50 = vpop.f32.mrb[6].mxu1 }
 0x253   :  { %v1293_v51 = vpop.f32.mrb[7].mxu1 }
 0x254   :  { %v1011_v52 = vadd.f32 %v1291_v49, %v1239_v47  ;;  %v1294_v53 = vadd.f32 %v1293_v51, %v1292_v50 }
 0x256   :  { %v1014_v54 = vadd.f32 %v1294_v53, %v1239_v47  ;;  %v1017_v55 = vmax.f32 %v1011_v52, 0.0 }
 0x258   :  { %v1018_v56 = vmax.f32 %v1014_v54, 0.0 }
 0x25a   :  { %v1019_v57 = vpack.c.bf16 %v1018_v56, %v1017_v55 }
 0x25c   :  { %1321 = vmatmul.mubr.bf16.vlgmr.msra.gmra.mrb[8].mxu1 %v1019_v57 }
 0x32f   :  { %v1118_v58 = vpop.f32.mrb[8].mxu1 }
 0x330   :  { %v1322_v59 = vpop.f32.mrb[9].mxu1 }
 0x331   :  { %v1121_v60 = vpop.f32.mrb[10].mxu1 }
 0x332   :  { %v1271_v61 = vpack.c.bf16 %v1121_v60, %v1118_v58  ;;  %v1323_v62 = vpop.f32.mrb[11].mxu1 }
 0x334   :  { %1272 = vst [vmem:[%s1993_s6] sm:$0xff] %v1271_v61  }
 0x335   :  { %1139 = vsyncpa [#allocation3], 1 }

</bundles_post_ra>
